<compile_context>
chip_gen: v6e
topology: v6e:2x2x1
jax: 0.10.0
libtpu: 0.0.40
codegen_flags: <defaults>
</compile_context>

<pallas_src>
import functools

import jax
import jax.numpy as jnp
from jax.experimental import pallas as pl
from jax.experimental.pallas import tpu as pltpu


D_IN = 28 * 28      # 784
D_HID = 256
N_OUT = 10
OUT_PAD = 128       # lane-dense output width (multiple of 128)
TB_MAX = 2048       # batch tile (multiple of 16 rows; ~15 MB f32 double-buffered)
NEG_BIG = -1e30     # padded-logit mask value (exp -> 0 exactly in f32)


def mlp_kernel(x_ref, w1_ref, b1_ref, w2_ref, b2_ref, o_ref):
    # x_ref:  (TB, 784)  f32  (cast to bf16 here, not in the wrapper)
    # w1_ref: (784, 256) bf16     b1_ref: (1, 256) f32
    # w2_ref: (256, 128) bf16     b2_ref: (1, 128) f32 (-1e30 in padded lanes)
    # o_ref:  (TB, 128)  bf16
    x = x_ref[...].astype(jnp.bfloat16)

    # Linear(784, 256) + ReLU  (bf16 MXU, f32 accumulate, f32 epilogue)
    h = jnp.dot(x, w1_ref[...], preferred_element_type=jnp.float32) + b1_ref[...]
    h = jnp.maximum(h, 0.0)

    # Linear(256, 10) padded to 128 output lanes (padded lanes get -1e30 bias).
    # Logits stay f32 so exp(-1e30 - m) underflows to exactly 0.
    logits = jnp.dot(h.astype(jnp.bfloat16), w2_ref[...],
                     preferred_element_type=jnp.float32) + b2_ref[...]

    # Numerically-stable softmax over the 128 lanes; padded lanes contribute 0
    # to the denominator, so it only sees the 10 real logits.
    m = jnp.max(logits, axis=1, keepdims=True)
    e = jnp.exp(logits - m)
    denom = jnp.sum(e, axis=1, keepdims=True)
    o_ref[...] = (e * pl.reciprocal(denom, approx=True)).astype(o_ref.dtype)


def prepare_params(w1, b1, w2, b2):
    """One-time weight prep: transpose to (in, out), cast to bf16, pad output
    lanes to OUT_PAD. Do this at weight-load time, NOT per forward call."""
    w1_t = jnp.asarray(w1, jnp.float32).T.astype(jnp.bfloat16)        # (784, 256)
    b1_2d = jnp.asarray(b1, jnp.float32).reshape(1, -1)               # (1, 256)

    w2_t = jnp.asarray(w2, jnp.float32).T.astype(jnp.bfloat16)        # (256, 10)
    w2_pad = jnp.zeros((D_HID, OUT_PAD), jnp.bfloat16).at[:, :N_OUT].set(w2_t)
    b2_pad = jnp.full((1, OUT_PAD), NEG_BIG, jnp.float32)
    b2_pad = b2_pad.at[0, :N_OUT].set(jnp.asarray(b2, jnp.float32))
    return w1_t, b1_2d, w2_pad, b2_pad


def _round_up(x, m):
    return ((x + m - 1) // m) * m


def _choose_tb(B, tb_max):
    """Batch-tile choice: full-extent block for tiny B, otherwise a multiple of
    16 rows, aiming for >= 2 grid steps so v7x's second TensorCore has work."""
    if B <= 16:
        return B                       # full-extent block (satisfies (8,128) rule)
    tb = min(tb_max, _round_up(pl.cdiv(B, 2), 16))
    return max(16, tb)


@functools.partial(jax.jit, static_argnames=("tb_max",))
def mlp_net_forward(x_nchw, params, tb_max=TB_MAX):
    """x_nchw: (B, 1, 28, 28) f32. Returns softmax probabilities (B, 10) f32."""
    w1_t, b1_2d, w2_pad, b2_pad = params
    B = x_nchw.shape[0]

    # nn.Flatten (row-major). NO dtype cast here — cast happens in-kernel.
    x_flat = x_nchw.reshape(B, D_IN)

    TB = _choose_tb(B, tb_max)
    grid = (pl.cdiv(B, TB),)

    cost = pl.CostEstimate(
        flops=2 * B * D_IN * D_HID + 2 * B * D_HID * OUT_PAD,
        transcendentals=B * OUT_PAD,
        bytes_accessed=(x_flat.size * 4                 # f32 x read
                        + w1_t.size * 2 + w2_pad.size * 2
                        + b1_2d.size * 4 + b2_pad.size * 4
                        + B * OUT_PAD * 2),             # bf16 out write
    )

    out_padded = pl.pallas_call(
        mlp_kernel,
        out_shape=jax.ShapeDtypeStruct((B, OUT_PAD), jnp.bfloat16),
        grid=grid,
        in_specs=[
            pl.BlockSpec((TB, D_IN), lambda i: (i, 0)),       # x: tiled over batch
            pl.BlockSpec((D_IN, D_HID), lambda i: (0, 0)),    # w1: VMEM-resident
            pl.BlockSpec((1, D_HID), lambda i: (0, 0)),       # b1: VMEM-resident
            pl.BlockSpec((D_HID, OUT_PAD), lambda i: (0, 0)), # w2: VMEM-resident
            pl.BlockSpec((1, OUT_PAD), lambda i: (0, 0)),     # b2: VMEM-resident
        ],
        out_specs=pl.BlockSpec((TB, OUT_PAD), lambda i: (i, 0)),
        compiler_params=pltpu.CompilerParams(
            dimension_semantics=("parallel",),                # megacore batch split
            vmem_limit_bytes=48 << 20),                       # covers f32 x @ TB=2048 on v5e
        cost_estimate=cost,
    )(x_flat, w1_t, b1_2d, w2_pad, b2_pad)

    # TODO(synk): if the consumer can read the padded (B,128) bf16 block directly,
    # drop this slice pass entirely.
    return out_padded[:, :N_OUT].astype(jnp.float32)


if __name__ == "__main__":
    key = jax.random.PRNGKey(0)
    k_x, k_w1, k_b1, k_w2, k_b2 = jax.random.split(key, 5)

    B = 2
    # Deterministic synthetic params (shapes from nn.Linear(784,256)/(256,10))
    x = jax.random.normal(k_x, (B, 1, 28, 28), dtype=jnp.float32)
    w1 = jax.random.normal(k_w1, (256, 784), dtype=jnp.float32) * 0.02
    b1 = jax.random.normal(k_b1, (256,), dtype=jnp.float32) * 0.02
    w2 = jax.random.normal(k_w2, (10, 256), dtype=jnp.float32) * 0.02
    b2 = jax.random.normal(k_b2, (10,), dtype=jnp.float32) * 0.02

    params = prepare_params(w1, b1, w2, b2)
    out = mlp_net_forward(x, params)
    out = jax.block_until_ready(out)

    # Plain-JAX f32 reference (tolerances loosened for bf16 MXU inputs, bf16
    # output store, and approx reciprocal in the softmax normalization).
    x_flat = x.reshape(B, -1)
    h_ref = jnp.maximum(x_flat @ w1.T + b1, 0.0)
    logits_ref = h_ref @ w2.T + b2
    probs_ref = jax.nn.softmax(logits_ref, axis=1)

    assert out.shape == (B, N_OUT)
    assert bool(jnp.all(jnp.isfinite(out)))
    assert jnp.allclose(out, probs_ref, atol=2e-2, rtol=2e-2)
    assert jnp.allclose(jnp.sum(out, axis=1), 1.0, atol=2e-2)

    print("KERNEL_OK")
</pallas_src>

<mosaic_0001>
module attributes {stable_mosaic.version = 11 : i64} {
  func.func @mlp_kernel(%arg0: i32, %arg1: memref<2x784xf32, #tpu.memory_space<vmem>>, %arg2: memref<784x256xbf16, #tpu.memory_space<vmem>>, %arg3: memref<1x256xf32, #tpu.memory_space<vmem>>, %arg4: memref<256x128xbf16, #tpu.memory_space<vmem>>, %arg5: memref<1x128xf32, #tpu.memory_space<vmem>>, %arg6: memref<2x128xbf16, #tpu.memory_space<vmem>>) attributes {dimension_semantics = [#tpu.dimension_semantics<parallel>], iteration_bounds = array<i64: 1>, scalar_prefetch = 0 : i64, scratch_operands = 0 : i64, tpu.core_type = #tpu.core_type<tc>, window_params = [{transform_indices = @transform_0, window_bounds = array<i64: 2, 784>}, {pipeline_mode = #tpu.pipeline_mode<synchronous>, transform_indices = @transform_1, window_bounds = array<i64: 784, 256>}, {pipeline_mode = #tpu.pipeline_mode<synchronous>, transform_indices = @transform_2, window_bounds = array<i64: 1, 256>}, {pipeline_mode = #tpu.pipeline_mode<synchronous>, transform_indices = @transform_3, window_bounds = array<i64: 256, 128>}, {pipeline_mode = #tpu.pipeline_mode<synchronous>, transform_indices = @transform_4, window_bounds = array<i64: 1, 128>}, {transform_indices = @transform_5, window_bounds = array<i64: 2, 128>}]} {
    %c0 = arith.constant 0 : index
    %c0_0 = arith.constant 0 : index
    %0 = vector.load %arg1[%c0, %c0_0] : memref<2x784xf32, #tpu.memory_space<vmem>>, vector<2x784xf32>
    %1 = arith.truncf %0 : vector<2x784xf32> to vector<2x784xbf16>
    %c0_1 = arith.constant 0 : index
    %c0_2 = arith.constant 0 : index
    %2 = vector.load %arg2[%c0_1, %c0_2] : memref<784x256xbf16, #tpu.memory_space<vmem>>, vector<784x256xbf16>
    %cst = arith.constant dense<0.000000e+00> : vector<2x256xf32>
    %3 = tpu.matmul %1, %2, %cst {dimension_numbers = #tpu.dot_dimension_numbers<[1], [0], [0], [1], [0, 0, 1, 1], [], []>} : vector<2x784xbf16>, vector<784x256xbf16>, vector<2x256xf32> -> vector<2x256xf32>
    %c0_3 = arith.constant 0 : index
    %c0_4 = arith.constant 0 : index
    %4 = vector.load %arg3[%c0_3, %c0_4] : memref<1x256xf32, #tpu.memory_space<vmem>>, vector<1x256xf32>
    %5 = vector.broadcast %4 : vector<1x256xf32> to vector<2x256xf32>
    %6 = arith.addf %3, %5 : vector<2x256xf32>
    %cst_5 = arith.constant 0.000000e+00 : f32
    %7 = vector.broadcast %cst_5 : f32 to vector<2x256xf32>
    %8 = arith.maximumf %6, %7 : vector<2x256xf32>
    %9 = arith.truncf %8 : vector<2x256xf32> to vector<2x256xbf16>
    %c0_6 = arith.constant 0 : index
    %c0_7 = arith.constant 0 : index
    %10 = vector.load %arg4[%c0_6, %c0_7] : memref<256x128xbf16, #tpu.memory_space<vmem>>, vector<256x128xbf16>
    %cst_8 = arith.constant dense<0.000000e+00> : vector<2x128xf32>
    %11 = tpu.matmul %9, %10, %cst_8 {dimension_numbers = #tpu.dot_dimension_numbers<[1], [0], [0], [1], [0, 0, 1, 1], [], []>} : vector<2x256xbf16>, vector<256x128xbf16>, vector<2x128xf32> -> vector<2x128xf32>
    %c0_9 = arith.constant 0 : index
    %c0_10 = arith.constant 0 : index
    %12 = vector.load %arg5[%c0_9, %c0_10] : memref<1x128xf32, #tpu.memory_space<vmem>>, vector<1x128xf32>
    %13 = vector.broadcast %12 : vector<1x128xf32> to vector<2x128xf32>
    %14 = arith.addf %11, %13 : vector<2x128xf32>
    %cst_11 = arith.constant dense<0xFF800000> : vector<2xf32>
    %15 = vector.multi_reduction <maximumf>, %14, %cst_11 [1] : vector<2x128xf32> to vector<2xf32>
    %16 = vector.shape_cast %15 : vector<2xf32> to vector<2x1xf32>
    %17 = vector.broadcast %16 : vector<2x1xf32> to vector<2x128xf32>
    %18 = arith.subf %14, %17 : vector<2x128xf32>
    %19 = math.exp %18 : vector<2x128xf32>
    %cst_12 = arith.constant dense<0.000000e+00> : vector<2xf32>
    %20 = vector.multi_reduction <add>, %19, %cst_12 [1] : vector<2x128xf32> to vector<2xf32>
    %21 = vector.shape_cast %20 : vector<2xf32> to vector<2x1xf32>
    %22 = tpu.reciprocal %21 {approx = true} : vector<2x1xf32> -> vector<2x1xf32>
    %23 = vector.broadcast %22 : vector<2x1xf32> to vector<2x128xf32>
    %24 = arith.mulf %19, %23 : vector<2x128xf32>
    %25 = arith.truncf %24 : vector<2x128xf32> to vector<2x128xbf16>
    %c0_13 = arith.constant 0 : index
    %c0_14 = arith.constant 0 : index
    %26 = vector.load %arg6[%c0_13, %c0_14] : memref<2x128xbf16, #tpu.memory_space<vmem>>, vector<2x128xbf16>
    tpu.vector_store %arg6[%c0_13, %c0_14], %25 {strides = array<i32>} : memref<2x128xbf16, #tpu.memory_space<vmem>>, vector<2x128xbf16>,
    return
  }
  func.func @transform_0(%arg0: i32) -> (i32, i32) {
    %c0_i32 = arith.constant 0 : i32
    %c0_i32_0 = arith.constant 0 : i32
    return %arg0, %c0_i32 : i32, i32
  }
  func.func @transform_1(%arg0: i32) -> (i32, i32) {
    %c0_i32 = arith.constant 0 : i32
    %c0_i32_0 = arith.constant 0 : i32
    %c0_i32_1 = arith.constant 0 : i32
    return %c0_i32, %c0_i32_0 : i32, i32
  }
  func.func @transform_2(%arg0: i32) -> (i32, i32) {
    %c0_i32 = arith.constant 0 : i32
    %c0_i32_0 = arith.constant 0 : i32
    %c0_i32_1 = arith.constant 0 : i32
    return %c0_i32, %c0_i32_0 : i32, i32
  }
  func.func @transform_3(%arg0: i32) -> (i32, i32) {
    %c0_i32 = arith.constant 0 : i32
    %c0_i32_0 = arith.constant 0 : i32
    %c0_i32_1 = arith.constant 0 : i32
    return %c0_i32, %c0_i32_0 : i32, i32
  }
  func.func @transform_4(%arg0: i32) -> (i32, i32) {
    %c0_i32 = arith.constant 0 : i32
    %c0_i32_0 = arith.constant 0 : i32
    %c0_i32_1 = arith.constant 0 : i32
    return %c0_i32, %c0_i32_0 : i32, i32
  }
  func.func @transform_5(%arg0: i32) -> (i32, i32) {
    %c0_i32 = arith.constant 0 : i32
    %c0_i32_0 = arith.constant 0 : i32
    return %arg0, %c0_i32 : i32, i32
  }
}

</mosaic_0001>

<bundles_post_ra>
// kernel: mlp_net_forward.1
= control target key start
LH: loop header
LB: loop body
LE: loop exit
PB: predicated region body
PF: predicated region fallthrough
CT: control target
= control target key end

     0   :  { %10 = vsyncpa [#allocation3], 0  ;;  %s1386_s18 = smov [#allocation2]   ;;  %s1505_s0 = inlined_call_operand.vmem [shape: f32[2,784], index: 0, kind: input, shape index: {}]   ;;  %s1506_s1 = inlined_call_operand.hbm [shape: bf16[784,256], index: 1, kind: input, shape index: {}]   ;;  %s1507_s2 = inlined_call_operand.vmem [shape: f32[1,256], index: 2, kind: input, shape index: {}]   ;;  %s1508_s3 = inlined_call_operand.vmem [shape: bf16[256,128], index: 3, kind: input, shape index: {}]   ;;  %s1509_s4 = inlined_call_operand.vmem [shape: f32[1,128], index: 4, kind: input, shape index: {}]   ;;  %s1510_s5 = inlined_call_operand.vmem [shape: bf16[2,128], index: 5, kind: output, shape index: {}]  }
   0x1   :  { %s18_s19 = sshll.u32 %s1386_s18, 4  ;;  %s19_s19 = int_to_ptr.vmem [resolvable:$true] %s18_s19 }
   0x2   :  { %s1372_s20 = scalar_lea.vmem %s19_s19, 12544  ;;  %p1377_p1 = scmp.lt.s32.totalorder %s19_s19, %s19_s19 }
   0x3   :  { %p1373_p0 = scmp.ne.s32.totalorder %s19_s19, %s1372_s20  ;;  %p1378_p2 = scmp.lt.s32.totalorder %s1372_s20, %s1372_s20 }
   0x5   :  { %p1379_p3 = por %p1378_p2, %p1377_p1 }
   0x7   :  { %p1380_p4 = pnand %p1379_p3, %p1373_p0 }
   0x9   :  { %1383 = shalt.err (!%p1380_p4)
}
   0xa   :  { %s1387_s21 = smov 128   ;;  %s1388_s22 = smov 8  }
   0xb   :  { %24 = dma.hbm_to_vmem [thread:$0]  %s1506_s1, 12544, %s19_s19, [#allocation3], %s1387_s21, %s1387_s21, %s1388_s22  }
   0xc   :  { %1384 = dma.done.wait [#allocation3], 12544  }
   0xd   :  { %1385 = vsyncadd [#allocation3], 4294954752  ;;  %v1195_v0 = vld [vmem:[#allocation2 + $0x74] ss:$8 sps:$4 sm:$0xff]   ;;  %v1197_v1 = vld [vmem:[#allocation2 + $0x70] ss:$8 sps:$4 sm:$0xff]   ;;  %v43_v37 = vlaneseq }
   0xe   :  { %690 = vmatprep.subr.bf16.mxu0 %v1195_v0  ;;  %v1198_v2 = vld [vmem:[#allocation2 + $0x174] ss:$8 sps:$4 sm:$0xff]   ;;  %v1200_v3 = vld [vmem:[#allocation2 + $0x170] ss:$8 sps:$4 sm:$0xff]   ;;  %v1201_v4 = vld [vmem:[#allocation2 + $0x64] ss:$8 sps:$4 sm:$0xff]  }
   0xf   :  { %691 = vmatpush1.bf16.msra.mxu0 %v1197_v1  ;;  %v1203_v5 = vld [vmem:[#allocation2 + $0x60] ss:$8 sps:$4 sm:$0xff]   ;;  %731 = vmatprep.subr.bf16.mxu1 %v1198_v2  ;;  %v1204_v6 = vld [vmem:[#allocation2 + $0x164] ss:$8 sps:$4 sm:$0xff]   ;;  %v1207_v8 = vld [vmem:[#allocation2 + $0x54] ss:$8 sps:$4 sm:$0xff]  }
  0x10   :  { %732 = vmatpush1.bf16.msra.mxu1 %v1200_v3  ;;  %692 = vmatprep.subr.bf16.mxu0 %v1201_v4  ;;  %v1206_v7 = vld [vmem:[#allocation2 + $0x160] ss:$8 sps:$4 sm:$0xff]   ;;  %v1209_v9 = vld [vmem:[#allocation2 + $0x50] ss:$8 sps:$4 sm:$0xff]   ;;  %v1210_v10 = vld [vmem:[#allocation2 + $0x154] ss:$8 sps:$4 sm:$0xff]  }
  0x11   :  { %733 = vmatprep.subr.bf16.mxu1 %v1204_v6  ;;  %v1213_v11 = vld [vmem:[#allocation2 + $0x44] ss:$8 sps:$4 sm:$0xff]   ;;  %v1212_v12 = vld [vmem:[#allocation2 + $0x150] ss:$8 sps:$4 sm:$0xff]   ;;  %v1215_v14 = vld [vmem:[#allocation2 + $0x40] ss:$8 sps:$4 sm:$0xff]  }
  0x12   :  { %v1216_v13 = vld [vmem:[#allocation2 + $0x144] ss:$8 sps:$4 sm:$0xff]   ;;  %v1219_v15 = vld [vmem:[#allocation2 + $0x34] ss:$8 sps:$4 sm:$0xff]   ;;  %v1218_v16 = vld [vmem:[#allocation2 + $0x140] ss:$8 sps:$4 sm:$0xff]  }
  0x13   :  { %693 = vmatpush1.bf16.msra.mxu0 %v1203_v5  ;;  %v1222_v17 = vld [vmem:[#allocation2 + $0x134] ss:$8 sps:$4 sm:$0xff]   ;;  %v1221_v18 = vld [vmem:[#allocation2 + $0x30] ss:$8 sps:$4 sm:$0xff]   ;;  %v1225_v19 = vld [vmem:[#allocation2 + $0x24] ss:$8 sps:$4 sm:$0xff]  }
  0x14   :  { %694 = vmatprep.subr.bf16.mxu0 %v1207_v8  ;;  %734 = vmatpush1.bf16.msra.mxu1 %v1206_v7  ;;  %v1224_v20 = vld [vmem:[#allocation2 + $0x130] ss:$8 sps:$4 sm:$0xff]   ;;  %v1228_v21 = vld [vmem:[#allocation2 + $0x124] ss:$8 sps:$4 sm:$0xff]   ;;  %v1227_v22 = vld [vmem:[#allocation2 + $0x20] ss:$8 sps:$4 sm:$0xff]  }
  0x15   :  { %735 = vmatprep.subr.bf16.mxu1 %v1210_v10  ;;  %v1231_v23 = vld [vmem:[#allocation2 + $0x14] ss:$8 sps:$4 sm:$0xff]   ;;  %v1230_v24 = vld [vmem:[#allocation2 + $0x120] ss:$8 sps:$4 sm:$0xff]   ;;  %v1233_v26 = vld [vmem:[#allocation2 + $0x10] ss:$8 sps:$4 sm:$0xff]  }
  0x16   :  { %v1234_v25 = vld [vmem:[#allocation2 + $0x114] ss:$8 sps:$4 sm:$0xff]   ;;  %v1237_v27 = vld [vmem:[#allocation2 + $0x4] ss:$8 sps:$4 sm:$0xff]   ;;  %v1236_v28 = vld [vmem:[#allocation2 + $0x110] ss:$8 sps:$4 sm:$0xff]  }
  0x17   :  { %695 = vmatpush1.bf16.msra.mxu0 %v1209_v9  ;;  %v1240_v29 = vld [vmem:[#allocation2 + $0x104] ss:$8 sps:$4 sm:$0xff]   ;;  %v1239_v30 = vld [vmem:[#allocation2] ss:$8 sps:$4 sm:$0xff]   ;;  %v1243_v31 = vld [vmem:[#allocation2 + $0xf4] ss:$8 sps:$4 sm:$0xff]  }
  0x18   :  { %696 = vmatprep.subr.bf16.mxu0 %v1213_v11  ;;  %736 = vmatpush1.bf16.msra.mxu1 %v1212_v12  ;;  %v1242_v32 = vld [vmem:[#allocation2 + $0x100] ss:$8 sps:$4 sm:$0xff]   ;;  %v1246_v33 = vld [vmem:[#allocation2 + $0x1f4] ss:$8 sps:$4 sm:$0xff]   ;;  %v1245_v34 = vld [vmem:[#allocation2 + $0xf0] ss:$8 sps:$4 sm:$0xff]  }
  0x19   :  { %737 = vmatprep.subr.bf16.mxu1 %v1216_v13  ;;  %v1389_v35 = vmov 1983009808   ;;  %v1249_v38 = vld [vmem:[#allocation2 + $0xe4] ss:$8 sps:$4 sm:$0xff]   ;;  %v1248_v39 = vld [vmem:[#allocation2 + $0x1f0] ss:$8 sps:$4 sm:$0xff]  }
  0x1a   :  { %v41_v36 = vunpack.c.l.s4 %v1389_v35  ;;  %v1252_v40 = vld [vmem:[#allocation2 + $0x1e4] ss:$8 sps:$4 sm:$0xff]   ;;  %v1251_v41 = vld [vmem:[#allocation2 + $0xe0] ss:$8 sps:$4 sm:$0xff]   ;;  %v1424_v43 = vshrl.u32 %v43_v37, 7  ;;  %vm686_vm0 = vcmask 130048  }
  0x1b   :  { %697 = vmatpush1.bf16.msra.mxu0 %v1215_v14  ;;  %v1255_v44 = vld [vmem:[#allocation2 + $0xd4] ss:$8 sps:$4 sm:$0xff]   ;;  %v1254_v45 = vld [vmem:[#allocation2 + $0x1e0] ss:$8 sps:$4 sm:$0xff]   ;;  %v1257_v47 = vld [vmem:[#allocation2 + $0xd0] ss:$8 sps:$4 sm:$0xff]  }
  0x1c   :  { %698 = vmatprep.subr.bf16.mxu0 %v1219_v15  ;;  %738 = vmatpush1.bf16.msra.mxu1 %v1218_v16  ;;  %v42_v42 = vunpack.c.0.s8 %v41_v36  ;;  %v1258_v46 = vld [vmem:[#allocation2 + $0x1d4] ss:$8 sps:$4 sm:$0xff]   ;;  %v1261_v49 = vld [vmem:[#allocation2 + $0xc4] ss:$8 sps:$4 sm:$0xff]   ;;  %v1260_v50 = vld [vmem:[#allocation2 + $0x1d0] ss:$8 sps:$4 sm:$0xff]  }
  0x1d   :  { %739 = vmatprep.subr.bf16.mxu1 %v1222_v17  ;;  %v1264_v51 = vld [vmem:[#allocation2 + $0x1c4] ss:$8 sps:$4 sm:$0xff]   ;;  %v1263_v53 = vld [vmem:[#allocation2 + $0xc0] ss:$8 sps:$4 sm:$0xff]   ;;  %v1267_v56 = vld [vmem:[#allocation2 + $0xb4] ss:$8 sps:$4 sm:$0xff]  }
  0x1e   :  { %v1427_v48 = vsub.s32 %v42_v42, %v1424_v43  ;;  %v35_v52 = vld [vmem:[%s1505_s0] sm:$0xff]  ;;  %v1270_v60 = vld [vmem:[#allocation2 + $0x1b4] ss:$8 sps:$4 sm:$0xff]   ;;  %v1269_v61 = vld [vmem:[#allocation2 + $0xb0] ss:$8 sps:$4 sm:$0xff]   ;;  %vm1033_vm1 = vcmask 1041408  }
  0x1f   :  { %699 = vmatpush1.bf16.msra.mxu0 %v1221_v18  ;;  %v39_v55 = vcombine.high %v35_v52, %v35_v52  ;;  %v1266_v57 = vld [vmem:[#allocation2 + $0x1c0] ss:$8 sps:$4 sm:$0xff]   ;;  %v1273_v0 = vld [vmem:[#allocation2 + $0xa4] ss:$8 sps:$4 sm:$0xff]   ;;  %v1272_v1 = vld [vmem:[#allocation2 + $0x1b0] ss:$8 sps:$4 sm:$0xff]  }
  0x20   :  { %700 = vmatprep.subr.bf16.mxu0 %v1225_v19  ;;  %740 = vmatpush1.bf16.msra.mxu1 %v1224_v20  ;;  %v46_v54 = vrot.slane %v35_v52, %v1427_v48  ;;  %v1276_v3 = vld [vmem:[#allocation2 + $0x1a4] ss:$8 sps:$4 sm:$0xff]   ;;  %v1275_v4 = vld [vmem:[#allocation2 + $0xa0] ss:$8 sps:$4 sm:$0xff]   ;;  %v1279_v5 = vld [vmem:[#allocation2 + $0x94] ss:$8 sps:$4 sm:$0xff]  }
  0x21   :  { %741 = vmatprep.subr.bf16.mxu1 %v1228_v21  ;;  %v53_v59 = vrot.slane %v39_v55, %v1427_v48  ;;  %v1278_v6 = vld [vmem:[#allocation2 + $0x1a0] ss:$8 sps:$4 sm:$0xff]   ;;  %v1282_v7 = vld [vmem:[#allocation2 + $0x194] ss:$8 sps:$4 sm:$0xff]   ;;  %v1281_v8 = vld [vmem:[#allocation2 + $0x90] ss:$8 sps:$4 sm:$0xff]  }
  0x22   :  { %v54_v58 = vcombine.high %v46_v54, %v46_v54  ;;  %v1285_v9 = vld [vmem:[#allocation2 + $0x84] ss:$8 sps:$4 sm:$0xff]   ;;  %v1284_v10 = vld [vmem:[#allocation2 + $0x190] ss:$8 sps:$4 sm:$0xff]   ;;  %v1287_v12 = vld [vmem:[#allocation2 + $0x80] ss:$8 sps:$4 sm:$0xff]   ;;  %v79_v15 = vpack.c.bf16 %v46_v54, %v46_v54 }
  0x23   :  { %701 = vmatpush1.bf16.msra.mxu0 %v1227_v22  ;;  %v55_v63 = vcombine.high %v53_v59, %v53_v59  ;;  %v1288_v11 = vld [vmem:[#allocation2 + $0x184] ss:$8 sps:$4 sm:$0xff]   ;;  %v1293_v13 = vld [vmem:[#allocation2 + $0x274] ss:$8 sps:$4 sm:$0xff]   ;;  %v1290_v14 = vld [vmem:[#allocation2 + $0x180] ss:$8 sps:$4 sm:$0xff]   ;;  %v81_v18 = vpack.c.bf16 %v53_v59, %v53_v59 }
  0x24   :  { %702 = vmatprep.subr.bf16.mxu0 %v1231_v23  ;;  %742 = vmatpush1.bf16.msra.mxu1 %v1230_v24  ;;  %v80_v62 = vpack.c.bf16 %v54_v58, %v54_v58  ;;  %v1291_v16 = vld [vmem:[#allocation2 + $0x270] ss:$8 sps:$4 sm:$0xff]   ;;  %v1297_v17 = vld [vmem:[#allocation2 + $0x264] ss:$8 sps:$4 sm:$0xff]   ;;  %v1295_v20 = vld [vmem:[#allocation2 + $0x260] ss:$8 sps:$4 sm:$0xff]  }
  0x25   :  { %743 = vmatprep.subr.bf16.mxu1 %v1234_v25  ;;  %v82_v2 = vpack.c.bf16 %v55_v63, %v55_v63  ;;  %v1339_v19 = vld [vmem:[#allocation2 + $0x304] ss:$8 sps:$4 sm:$0xff]   ;;  %v1337_v21 = vld [vmem:[#allocation2 + $0x300] ss:$8 sps:$4 sm:$0xff]   ;;  %v1300_v23 = vld [vmem:[#allocation2 + $0x254] ss:$8 sps:$4 sm:$0xff]  }
  0x26   :  { %722 = vmatprep.mubr.bf16.mxu0 %v80_v62  ;;  %v36_v22 = vld [vmem:[%s1505_s0 + $0x8] sm:$0x3f]  ;;  %v1304_v35 = vld [vmem:[#allocation2 + $0x230] ss:$8 sps:$4 sm:$0xff]   ;;  %v1318_v42 = vld [vmem:[#allocation2 + $0x2f4] ss:$8 sps:$4 sm:$0xff]  }
  0x27   :  { %703 = vmatpush1.bf16.msra.mxu0 %v1233_v26  ;;  %763 = vmatprep.mubr.bf16.mxu1 %v82_v2  ;;  %v56_v24 = vcombine.high %v36_v22, %v36_v22  ;;  %v1438_v25 = vrot.slane %v36_v22, %v1427_v48  ;;  %v1309_v36 = vld [vmem:[#allocation2 + $0x224] ss:$8 sps:$4 sm:$0xff]   ;;  %v1307_v37 = vld [vmem:[#allocation2 + $0x220] ss:$8 sps:$4 sm:$0xff]   ;;  %v1328_v52 = vld [vmem:[#allocation2 + $0x2b0] ss:$8 sps:$4 sm:$0xff]  }
  0x28   :  { %704 = vmatprep.subr.bf16.mxu0 %v1237_v27  ;;  %744 = vmatpush1.bf16.msra.mxu1 %v1236_v28  ;;  %v1298_v28 = vld [vmem:[#allocation2 + $0x250] ss:$8 sps:$4 sm:$0xff]   ;;  %v1331_v54 = vld [vmem:[#allocation2 + $0x2a0] ss:$8 sps:$4 sm:$0xff]   ;;  %v1336_v55 = vld [vmem:[#allocation2 + $0x294] ss:$8 sps:$4 sm:$0xff]  }
  0x29   :  { %745 = vmatprep.subr.bf16.mxu1 %v1240_v29  ;;  %v70_v26 = vrot.slane %v56_v24, %v1427_v48  ;;  %v71_v27 = vcombine.high %v1438_v25, %v1438_v25  ;;  %v1390_v29 = vmov 0   ;;  %v1322_v48 = vld [vmem:[#allocation2 + $0x2d0] ss:$8 sps:$4 sm:$0xff]   ;;  %v1340_v58 = vld [vmem:[#allocation2 + $0x280] ss:$8 sps:$4 sm:$0xff]   ;;  %v83_v59 = vpack.c.bf16 %v1438_v25, %v1438_v25 }
  0x2a   :  { %v1346_v62 = vld [vmem:[%s1508_s3 + $0x70] sm:$0xff]   ;;  %v1350_v2 = vld [vmem:[%s1508_s3 + $0x60] sm:$0xff]   ;;  %v188_v24 = vsub.s32 0, %v1424_v43 }
  0x2b   :  { %705 = vmatpush1.bf16.msra.mxu0 %v1239_v30  ;;  %v1303_v30 = vld [vmem:[#allocation2 + $0x244] ss:$8 sps:$4 sm:$0xff]   ;;  %v1347_v63 = vld [vmem:[%s1508_s3 + $0x30] sm:$0xff]   ;;  %v184_v25 = vld [vmem:[%s1507_s2] sm:$0x3] }
  0x2c   :  { %706 = vmatprep.subr.bf16.mxu0 %v1243_v31  ;;  %746 = vmatpush1.bf16.msra.mxu1 %v1242_v32  ;;  %v84_v31 = vpack.c.bf16 %v71_v27, %v71_v27  ;;  %v85_v32 = vpack.c.bf16 %v70_v26, %v70_v26  ;;  %v192_v26 = vsub.s32 1, %v1424_v43  ;;  %v189_v27 = vrot.slane %v184_v25, %v188_v24 }
  0x2d   :  { %747 = vmatprep.subr.bf16.mxu1 %v1246_v33  ;;  %v1301_v33 = vld [vmem:[#allocation2 + $0x240] ss:$8 sps:$4 sm:$0xff]  }
  0x2f   :  { %707 = vmatpush2.bf16.msra.mxu0 %v1245_v34  ;;  %v1306_v34 = vld [vmem:[#allocation2 + $0x234] ss:$8 sps:$4 sm:$0xff]  }
  0x30   :  { %708 = vmatprep.subr.bf16.mxu0 %v1249_v38  ;;  %748 = vmatpush2.bf16.msra.mxu1 %v1248_v39  ;;  %v1312_v38 = vld [vmem:[#allocation2 + $0x214] ss:$8 sps:$4 sm:$0xff]   ;;  %v1310_v39 = vld [vmem:[#allocation2 + $0x210] ss:$8 sps:$4 sm:$0xff]  }
  0x31   :  { %749 = vmatprep.subr.bf16.mxu1 %v1252_v40  ;;  %v1315_v40 = vld [vmem:[#allocation2 + $0x204] ss:$8 sps:$4 sm:$0xff]  }
  0x33   :  { %709 = vmatpush2.bf16.msra.mxu0 %v1251_v41  ;;  %v1313_v41 = vld [vmem:[#allocation2 + $0x200] ss:$8 sps:$4 sm:$0xff]  }
  0x34   :  { %710 = vmatprep.subr.bf16.mxu0 %v1255_v44  ;;  %750 = vmatpush2.bf16.msra.mxu1 %v1254_v45  ;;  %v1316_v44 = vld [vmem:[#allocation2 + $0x2f0] ss:$8 sps:$4 sm:$0xff]   ;;  %v1321_v45 = vld [vmem:[#allocation2 + $0x2e4] ss:$8 sps:$4 sm:$0xff]  }
  0x35   :  { %751 = vmatprep.subr.bf16.mxu1 %v1258_v46  ;;  %v1319_v46 = vld [vmem:[#allocation2 + $0x2e0] ss:$8 sps:$4 sm:$0xff]  }
  0x37   :  { %711 = vmatpush2.bf16.msra.mxu0 %v1257_v47  ;;  %v1324_v47 = vld [vmem:[#allocation2 + $0x2d4] ss:$8 sps:$4 sm:$0xff]  }
  0x38   :  { %712 = vmatprep.subr.bf16.mxu0 %v1261_v49  ;;  %752 = vmatpush2.bf16.msra.mxu1 %v1260_v50  ;;  %v1327_v49 = vld [vmem:[#allocation2 + $0x2c4] ss:$8 sps:$4 sm:$0xff]   ;;  %v1325_v50 = vld [vmem:[#allocation2 + $0x2c0] ss:$8 sps:$4 sm:$0xff]  }
  0x39   :  { %753 = vmatprep.subr.bf16.mxu1 %v1264_v51  ;;  %v1330_v51 = vld [vmem:[#allocation2 + $0x2b4] ss:$8 sps:$4 sm:$0xff]  }
  0x3b   :  { %713 = vmatpush2.bf16.msra.mxu0 %v1263_v53  ;;  %v1333_v53 = vld [vmem:[#allocation2 + $0x2a4] ss:$8 sps:$4 sm:$0xff]  }
  0x3c   :  { %714 = vmatprep.subr.bf16.mxu0 %v1267_v56  ;;  %754 = vmatpush2.bf16.msra.mxu1 %v1266_v57  ;;  %v1334_v56 = vld [vmem:[#allocation2 + $0x290] ss:$8 sps:$4 sm:$0xff]   ;;  %v1342_v57 = vld [vmem:[#allocation2 + $0x284] ss:$8 sps:$4 sm:$0xff]  }
  0x3d   :  { %755 = vmatprep.subr.bf16.mxu1 %v1270_v60  ;;  %v1344_v60 = vld [vmem:[%s1508_s3 + $0x78] sm:$0xff]  }
  0x3f   :  { %715 = vmatpush2.bf16.msra.mxu0 %v1269_v61  ;;  %v1345_v61 = vld [vmem:[%s1508_s3 + $0x38] sm:$0xff]  }
  0x40   :  { %716 = vmatprep.subr.bf16.mxu0 %v1273_v0  ;;  %756 = vmatpush2.bf16.msra.mxu1 %v1272_v1  ;;  %v1348_v0 = vld [vmem:[%s1508_s3 + $0x68] sm:$0xff]  }
  0x41   :  { %757 = vmatprep.subr.bf16.mxu1 %v1276_v3  ;;  %v1349_v1 = vld [vmem:[%s1508_s3 + $0x28] sm:$0xff]   ;;  %v1351_v3 = vld [vmem:[%s1508_s3 + $0x20] sm:$0xff]  }
  0x43   :  { %717 = vmatpush2.bf16.msra.mxu0 %v1275_v4  ;;  %v1352_v4 = vld [vmem:[%s1508_s3 + $0x58] sm:$0xff]  }
  0x44   :  { %718 = vmatprep.subr.bf16.mxu0 %v1279_v5  ;;  %758 = vmatpush2.bf16.msra.mxu1 %v1278_v6  ;;  %v1353_v5 = vld [vmem:[%s1508_s3 + $0x18] sm:$0xff]   ;;  %v1354_v6 = vld [vmem:[%s1508_s3 + $0x50] sm:$0xff]  }
  0x45   :  { %759 = vmatprep.subr.bf16.mxu1 %v1282_v7  ;;  %v1355_v7 = vld [vmem:[%s1508_s3 + $0x10] sm:$0xff]  }
  0x47   :  { %719 = vmatpush2.bf16.msra.mxu0 %v1281_v8  ;;  %v1356_v8 = vld [vmem:[%s1508_s3 + $0x48] sm:$0xff]  }
  0x48   :  { %720 = vmatprep.subr.bf16.mxu0 %v1285_v9  ;;  %760 = vmatpush2.bf16.msra.mxu1 %v1284_v10  ;;  %v1357_v9 = vld [vmem:[%s1508_s3 + $0x8] sm:$0xff]   ;;  %v1358_v10 = vld [vmem:[%s1508_s3 + $0x40] sm:$0xff]  }
  0x49   :  { %761 = vmatprep.subr.bf16.mxu1 %v1288_v11  ;;  %v1359_v11 = vld [vmem:[%s1508_s3] sm:$0xff]  }
  0x4b   :  { %721 = vmatpush2.bf16.msra.mxu0 %v1287_v12 }
  0x4c   :  { %772 = vmatprep.subr.bf16.mxu0 %v1293_v13  ;;  %762 = vmatpush2.bf16.msra.mxu1 %v1290_v14 }
  0x4d   :  { %827 = vmatprep.subr.bf16.mxu1 %v1339_v19 }
  0x4e   :  { %723 = vmatmul.mubr.bf16.vlgmr.msra.gmra.mxu0 %v79_v15 }
  0x4f   :  { %773 = vmatpush1.bf16.msra.mxu0 %v1291_v16  ;;  %764 = vmatmul.mubr.bf16.vlgmr.msra.gmra.mxu1 %v81_v18 }
  0x50   :  { %774 = vmatprep.subr.bf16.mxu0 %v1297_v17  ;;  %828 = vmatpush1.bf16.msra.mxu1 %v1337_v21 }
  0x51   :  { %845 = vmatprep.mubr.bf16.mxu1 %v1390_v29  ;;  %804 = vmatprep.mubr.bf16.mxu0 %v84_v31 }
  0x52   :  { %1168 = vmatprep.subr.bf16.mxu1 %v1344_v60 }
  0x53   :  { %775 = vmatpush1.bf16.msra.mxu0 %v1295_v20 }
  0x54   :  { %776 = vmatprep.subr.bf16.mxu0 %v1300_v23 }
  0x57   :  { %777 = vmatpush1.bf16.msra.mxu0 %v1298_v28  ;;  %1150 = vmatmul.mubr.msk.bf16.vlgmr.msra.gmra.mxu1 %vm686_vm0, %v85_v32  ;;  %v193_v28 = vrot.slane %v184_v25, %v192_v26 }
  0x58   :  { %778 = vmatprep.subr.bf16.mxu0 %v1303_v30  ;;  %1169 = vmatpush3.bf16.msra.mxu1 %v1345_v61 }
  0x59   :  { %1170 = vmatprep.subr.bf16.mxu1 %v1346_v62 }
  0x5b   :  { %779 = vmatpush1.bf16.msra.mxu0 %v1301_v33 }
  0x5c   :  { %780 = vmatprep.subr.bf16.mxu0 %v1306_v34  ;;  %1171 = vmatpush3.bf16.msra.mxu1 %v1347_v63 }
  0x5d   :  { %1172 = vmatprep.subr.bf16.mxu1 %v1348_v0 }
  0x5f   :  { %781 = vmatpush1.bf16.msra.mxu0 %v1304_v35 }
  0x60   :  { %782 = vmatprep.subr.bf16.mxu0 %v1309_v36  ;;  %1173 = vmatpush3.bf16.msra.mxu1 %v1349_v1 }
  0x61   :  { %1174 = vmatprep.subr.bf16.mxu1 %v1350_v2 }
  0x63   :  { %783 = vmatpush1.bf16.msra.mxu0 %v1307_v37 }
  0x64   :  { %784 = vmatprep.subr.bf16.mxu0 %v1312_v38  ;;  %1175 = vmatpush3.bf16.msra.mxu1 %v1351_v3 }
  0x65   :  { %1176 = vmatprep.subr.bf16.mxu1 %v1352_v4 }
  0x67   :  { %785 = vmatpush1.bf16.msra.mxu0 %v1310_v39 }
  0x68   :  { %786 = vmatprep.subr.bf16.mxu0 %v1315_v40  ;;  %1177 = vmatpush3.bf16.msra.mxu1 %v1353_v5 }
  0x69   :  { %1178 = vmatprep.subr.bf16.mxu1 %v1354_v6 }
  0x6b   :  { %787 = vmatpush1.bf16.msra.mxu0 %v1313_v41 }
  0x6c   :  { %788 = vmatprep.subr.bf16.mxu0 %v1318_v42  ;;  %1179 = vmatpush3.bf16.msra.mxu1 %v1355_v7 }
  0x6d   :  { %1180 = vmatprep.subr.bf16.mxu1 %v1356_v8 }
  0x6f   :  { %789 = vmatpush2.bf16.msra.mxu0 %v1316_v44 }
  0x70   :  { %790 = vmatprep.subr.bf16.mxu0 %v1321_v45  ;;  %1181 = vmatpush3.bf16.msra.mxu1 %v1357_v9 }
  0x71   :  { %1182 = vmatprep.subr.bf16.mxu1 %v1358_v10 }
  0x73   :  { %791 = vmatpush2.bf16.msra.mxu0 %v1319_v46 }
  0x74   :  { %792 = vmatprep.subr.bf16.mxu0 %v1324_v47  ;;  %1183 = vmatpush3.bf16.msra.mxu1 %v1359_v11  ;;  %v1151_v47 = vld [vmem:[%s1509_s4] ss:$0 sm:$0xff] }
  0x77   :  { %793 = vmatpush2.bf16.msra.mxu0 %v1322_v48 }
  0x78   :  { %794 = vmatprep.subr.bf16.mxu0 %v1327_v49 }
  0x7b   :  { %795 = vmatpush2.bf16.msra.mxu0 %v1325_v50 }
  0x7c   :  { %796 = vmatprep.subr.bf16.mxu0 %v1330_v51 }
  0x7f   :  { %797 = vmatpush2.bf16.msra.mxu0 %v1328_v52 }
  0x80   :  { %798 = vmatprep.subr.bf16.mxu0 %v1333_v53 }
  0x83   :  { %799 = vmatpush2.bf16.msra.mxu0 %v1331_v54 }
  0x84   :  { %800 = vmatprep.subr.bf16.mxu0 %v1336_v55 }
  0x87   :  { %801 = vmatpush2.bf16.msra.mxu0 %v1334_v56 }
  0x88   :  { %802 = vmatprep.subr.bf16.mxu0 %v1342_v57 }
  0x8b   :  { %803 = vmatpush2.bf16.msra.mxu0 %v1340_v58 }
  0x8e   :  { %805 = vmatmul.mubr.bf16.vlgmr.msra.gmra.mxu0 %v83_v59 }
 0x10e   :  { %v724_v12 = vpop.f32.mrf.mxu0 }
 0x10f   :  { %v765_v14 = vpop.f32.mrf.mxu1  ;;  %v725_v29 = vadd.f32 %v724_v12, %v189_v27 }
 0x110   :  { %v726_v13 = vpop.f32.mrf.mxu0 }
 0x111   :  { %v767_v16 = vpop.f32.mrf.mxu1  ;;  %v727_v30 = vadd.f32 %v726_v13, %v193_v28  ;;  %v766_v31 = vadd.f32 %v765_v14, %v725_v29 }
 0x112   :  { %v728_v15 = vpop.f32.mrf.mxu0 }
 0x113   :  { %v769_v18 = vpop.f32.mrf.mxu1  ;;  %v768_v33 = vadd.f32 %v767_v16, %v727_v30 }
 0x114   :  { %v729_v17 = vpop.f32.mrf.mxu0 }
 0x115   :  { %v770_v19 = vpop.f32.mrf.mxu1 }
 0x117   :  { %v847_v20 = vpop.f32.mrf.mxu1 }
 0x119   :  { %v849_v21 = vpop.f32.mrf.mxu1 }
 0x11b   :  { %v851_v22 = vpop.f32.mrf.mxu1 }
 0x11d   :  { %v852_v23 = vpop.f32.mrf.mxu1 }
 0x14e   :  { %v806_v32 = vpop.f32.mrf.mxu0 }
 0x14f   :  { %v807_v34 = vadd.f32 %v806_v32, %v766_v31 }
 0x150   :  { %v808_v35 = vpop.f32.mrf.mxu0 }
 0x151   :  { %v848_v36 = vadd.f32 %v847_v20, %v807_v34  ;;  %v809_v37 = vadd.f32 %v808_v35, %v768_v33 }
 0x152   :  { %v810_v38 = vpop.f32.mrf.mxu0 }
 0x153   :  { %v850_v39 = vadd.f32 %v849_v21, %v809_v37  ;;  %v854_v40 = vmax.f32 %v848_v36, 0.0 }
 0x154   :  { %v811_v41 = vpop.f32.mrf.mxu0 }
 0x155   :  { %v855_v42 = vmax.f32 %v850_v39, 0.0  ;;  %v856_v45 = vpack.c.bf16 %v854_v40, %v854_v40 }
 0x157   :  { %v857_v44 = vpack.c.bf16 %v855_v42, %v855_v42 }
 0x159   :  { %1025 = vmatprep.mubr.bf16.mxu1 %v857_v44 }
 0x15a   :  { %1026 = vmatmul.mubr.bf16.vlgmr.msra.gmra.mxu1 %v856_v45 }
 0x21a   :  { %v1184_v43 = vpop.f32.mrf.mxu1 }
 0x21c   :  { %v1185_v46 = vpop.f32.mrf.mxu1 }
 0x21d   :  { %v1186_v48 = vadd.f32 %v1185_v46, %v1184_v43 }
 0x21e   :  { %v1187_v49 = vpop.f32.mrf.mxu1 }
 0x21f   :  { %v1028_v50 = vadd.f32 %v1186_v48, %v1151_v47 }
 0x220   :  { %v1188_v51 = vpop.f32.mrf.mxu1 }
 0x221   :  { %v1034_v52 = vsel %vm1033_vm1, %v1028_v50, -inf }
 0x222   :  { %1035 = vmax.xlane.f32.xlu0 %v1034_v52 }
 0x2ab   :  { %v1036_v53 = vpop.xlane.xlu0 %1035 }
 0x2ac   :  { %v1037_v54 = vsub.f32 %v1028_v50, %v1036_v53 }
 0x2ae   :  { %v1038_v55 = vmul.f32 1.442695, %v1037_v54 }
 0x2b0   :  { %1360 = vpow2.f32 %v1038_v55 }
 0x2bd   :  { %v1361_v56 = vpop.eup %1360 }
 0x2be   :  { %v1040_v57 = vsel %vm1033_vm1, %v1361_v56, 0.0 }
 0x2bf   :  { %1041 = vadd.xlane.f32.xlu0 %v1040_v57 }
 0x348   :  { %v1042_v58 = vpop.xlane.xlu0 %1041 }
 0x349   :  { %1362 = vrcp.f32 %v1042_v58 }
 0x356   :  { %v1363_v59 = vpop.eup %1362 }
 0x357   :  { %v1044_v60 = vmul.f32 %v1363_v59, %v1361_v56 }
 0x359   :  { %v1045_v61 = vpack.c.bf16 %v1044_v60, %v1044_v60 }
 0x35b   :  { %1046 = vst [vmem:[%s1510_s5] sm:$0x1] %v1045_v61 }
 0x35c   :  { %1051 = vsyncpa [#allocation3], 1 }

</bundles_post_ra>
